<compile_context>
chip_gen: v7x
topology: tpu7x:2x2x1
jax: 0.10.0
libtpu: 0.0.40
codegen_flags: <defaults>
</compile_context>

<pallas_src>
import jax
import jax.numpy as jnp
from jax.experimental import pallas as pl
from jax.experimental.pallas import tpu as pltpu


def dqn_kernel(x_ref, w1_ref, b1_ref, w2_ref, b2_ref, w3_ref, b3_ref, o_ref):
    # x.float() / 5 -- the 1/5 scale is pre-folded into w1, so the kernel only
    # casts the (int8) observations to bf16 for the MXU.
    fx = x_ref[...].astype(jnp.bfloat16)

    # Linear(D_in, 64) + ReLU   (bf16 MXU operands, f32 accumulation)
    h1 = jnp.dot(fx, w1_ref[...], preferred_element_type=jnp.float32) + b1_ref[...]
    h1 = jnp.maximum(h1, 0.0).astype(jnp.bfloat16)

    # Linear(64, 32) + ReLU
    h2 = jnp.dot(h1, w2_ref[...], preferred_element_type=jnp.float32) + b2_ref[...]
    h2 = jnp.maximum(h2, 0.0).astype(jnp.bfloat16)

    # Linear(32, n_actions)  (output lane width < 128 -> masked stores; output
    # bytes are tiny relative to x so we leave it unpadded)
    o_ref[...] = jnp.dot(h2, w3_ref[...], preferred_element_type=jnp.float32) + b3_ref[...]


def _round_up(x, m):
    return ((x + m - 1) // m) * m


def dqn_forward(x, kparams, *, tile_b=512):
    """x: (B, D_in) int/float observations.  kparams: kernel-ready params
    (w* as bf16 (in,out) with the 1/5 scale folded into w1, b* as f32 (1,out))."""
    w1, b1 = kparams["w1"], kparams["b1"]
    w2, b2 = kparams["w2"], kparams["b2"]
    w3, b3 = kparams["w3"], kparams["b3"]

    B, d_in = x.shape
    n_actions = w3.shape[1]

    # Choose a batch tile: multiple of 8 (sublane), at most tile_b, at least B rounded up.
    tb = min(tile_b, _round_up(B, 8))
    tb = _round_up(tb, 8)
    b_pad = _round_up(B, tb)
    if b_pad != B:
        x = jnp.pad(x, ((0, b_pad - B), (0, 0)))

    grid = (b_pad // tb,)

    # Weights/biases: full-array blocks, constant index map -> resident in VMEM.
    const = lambda shape: pl.BlockSpec(shape, lambda i: tuple(0 for _ in shape))

    out = pl.pallas_call(
        dqn_kernel,
        out_shape=jax.ShapeDtypeStruct((b_pad, n_actions), jnp.float32),
        grid_spec=pltpu.PrefetchScalarGridSpec(
            num_scalar_prefetch=0,
            grid=grid,
            in_specs=[
                pl.BlockSpec((tb, d_in), lambda i: (i, 0)),     # x: batch-tiled
                const(w1.shape), const(b1.shape),
                const(w2.shape), const(b2.shape),
                const(w3.shape), const(b3.shape),
            ],
            out_specs=pl.BlockSpec((tb, n_actions), lambda i: (i, 0)),
        ),
        compiler_params=pltpu.CompilerParams(
            dimension_semantics=("parallel",),   # shards batch tiles across TCs on v7x
        ),
    )(x, w1, b1, w2, b2, w3, b3)

    return out[:B]


def init_params(key, input_dim, n_actions):
    """f32 reference params mimicking PyTorch nn.Linear defaults:
    U(-1/sqrt(fan_in), 1/sqrt(fan_in)), stored as (in, out) / (1, out)."""
    dims = [(input_dim, 64), (64, 32), (32, n_actions)]
    params = {}
    for i, (fan_in, fan_out) in enumerate(dims, start=1):
        key, kw, kb = jax.random.split(key, 3)
        bound = 1.0 / (fan_in ** 0.5)
        params[f"w{i}"] = jax.random.uniform(
            kw, (fan_in, fan_out), jnp.float32, minval=-bound, maxval=bound)
        params[f"b{i}"] = jax.random.uniform(
            kb, (1, fan_out), jnp.float32, minval=-bound, maxval=bound)
    return params


def prepare_kernel_params(params):
    """Fold the 1/5 input scale into w1 and cast weights to bf16 (MXU-native).
    Biases stay f32 (added after f32 accumulation)."""
    return {
        "w1": (params["w1"] * 0.2).astype(jnp.bfloat16),
        "b1": params["b1"].astype(jnp.float32),
        "w2": params["w2"].astype(jnp.bfloat16),
        "b2": params["b2"].astype(jnp.float32),
        "w3": params["w3"].astype(jnp.bfloat16),
        "b3": params["b3"].astype(jnp.float32),
    }


def dqn_reference(x, params):
    """Pure-JAX f32 reference matching the PyTorch forward."""
    fx = x.astype(jnp.float32) / 5.0
    h1 = jnp.maximum(fx @ params["w1"] + params["b1"], 0.0)
    h2 = jnp.maximum(h1 @ params["w2"] + params["b2"], 0.0)
    return h2 @ params["w3"] + params["b3"]


if __name__ == "__main__":
    key = jax.random.PRNGKey(0)
    k_param, k_x = jax.random.split(key)

    batch, input_dim, n_actions = 32, 32, 8
    params = init_params(k_param, input_dim, n_actions)
    kparams = prepare_kernel_params(params)

    # DQN-style small-integer observations, passed as int8 (forward does x.float()/5).
    x = jax.random.randint(k_x, (batch, input_dim), minval=0, maxval=10).astype(jnp.int8)

    out = dqn_forward(x, kparams)
    out = jax.block_until_ready(out)

    ref = dqn_reference(x, params)
    assert out.shape == (batch, n_actions)
    # bf16 MXU operands => compare against the f32 reference at bf16 precision.
    assert jnp.allclose(out, ref, atol=5e-2, rtol=5e-2), "mismatch vs reference"

    print("KERNEL_OK")
</pallas_src>

<mosaic_0001>
module attributes {stable_mosaic.version = 11 : i64} {
  func.func @dqn_kernel(%arg0: i32, %arg1: memref<32x32xi8, #tpu.memory_space<vmem>>, %arg2: memref<32x64xbf16, #tpu.memory_space<vmem>>, %arg3: memref<1x64xf32, #tpu.memory_space<vmem>>, %arg4: memref<64x32xbf16, #tpu.memory_space<vmem>>, %arg5: memref<1x32xf32, #tpu.memory_space<vmem>>, %arg6: memref<32x8xbf16, #tpu.memory_space<vmem>>, %arg7: memref<1x8xf32, #tpu.memory_space<vmem>>, %arg8: memref<32x8xf32, #tpu.memory_space<vmem>>) attributes {dimension_semantics = [#tpu.dimension_semantics<parallel>], iteration_bounds = array<i64: 1>, scalar_prefetch = 0 : i64, scratch_operands = 0 : i64, tpu.core_type = #tpu.core_type<tc>, window_params = [{transform_indices = @transform_0, window_bounds = array<i64: 32, 32>}, {pipeline_mode = #tpu.pipeline_mode<synchronous>, transform_indices = @transform_1, window_bounds = array<i64: 32, 64>}, {pipeline_mode = #tpu.pipeline_mode<synchronous>, transform_indices = @transform_2, window_bounds = array<i64: 1, 64>}, {pipeline_mode = #tpu.pipeline_mode<synchronous>, transform_indices = @transform_3, window_bounds = array<i64: 64, 32>}, {pipeline_mode = #tpu.pipeline_mode<synchronous>, transform_indices = @transform_4, window_bounds = array<i64: 1, 32>}, {pipeline_mode = #tpu.pipeline_mode<synchronous>, transform_indices = @transform_5, window_bounds = array<i64: 32, 8>}, {pipeline_mode = #tpu.pipeline_mode<synchronous>, transform_indices = @transform_6, window_bounds = array<i64: 1, 8>}, {transform_indices = @transform_7, window_bounds = array<i64: 32, 8>}]} {
    %c0 = arith.constant 0 : index
    %c0_0 = arith.constant 0 : index
    %0 = vector.load %arg1[%c0, %c0_0] : memref<32x32xi8, #tpu.memory_space<vmem>>, vector<32x32xi8>
    %1 = arith.sitofp %0 : vector<32x32xi8> to vector<32x32xbf16>
    %c0_1 = arith.constant 0 : index
    %c0_2 = arith.constant 0 : index
    %2 = vector.load %arg2[%c0_1, %c0_2] : memref<32x64xbf16, #tpu.memory_space<vmem>>, vector<32x64xbf16>
    %cst = arith.constant dense<0.000000e+00> : vector<32x64xf32>
    %3 = tpu.matmul %1, %2, %cst {dimension_numbers = #tpu.dot_dimension_numbers<[1], [0], [0], [1], [0, 0, 1, 1], [], []>} : vector<32x32xbf16>, vector<32x64xbf16>, vector<32x64xf32> -> vector<32x64xf32>
    %c0_3 = arith.constant 0 : index
    %c0_4 = arith.constant 0 : index
    %4 = vector.load %arg3[%c0_3, %c0_4] : memref<1x64xf32, #tpu.memory_space<vmem>>, vector<1x64xf32>
    %5 = vector.broadcast %4 : vector<1x64xf32> to vector<32x64xf32>
    %6 = arith.addf %3, %5 : vector<32x64xf32>
    %cst_5 = arith.constant 0.000000e+00 : f32
    %7 = vector.broadcast %cst_5 : f32 to vector<32x64xf32>
    %8 = arith.maximumf %6, %7 : vector<32x64xf32>
    %9 = arith.truncf %8 : vector<32x64xf32> to vector<32x64xbf16>
    %c0_6 = arith.constant 0 : index
    %c0_7 = arith.constant 0 : index
    %10 = vector.load %arg4[%c0_6, %c0_7] : memref<64x32xbf16, #tpu.memory_space<vmem>>, vector<64x32xbf16>
    %cst_8 = arith.constant dense<0.000000e+00> : vector<32x32xf32>
    %11 = tpu.matmul %9, %10, %cst_8 {dimension_numbers = #tpu.dot_dimension_numbers<[1], [0], [0], [1], [0, 0, 1, 1], [], []>} : vector<32x64xbf16>, vector<64x32xbf16>, vector<32x32xf32> -> vector<32x32xf32>
    %c0_9 = arith.constant 0 : index
    %c0_10 = arith.constant 0 : index
    %12 = vector.load %arg5[%c0_9, %c0_10] : memref<1x32xf32, #tpu.memory_space<vmem>>, vector<1x32xf32>
    %13 = vector.broadcast %12 : vector<1x32xf32> to vector<32x32xf32>
    %14 = arith.addf %11, %13 : vector<32x32xf32>
    %cst_11 = arith.constant 0.000000e+00 : f32
    %15 = vector.broadcast %cst_11 : f32 to vector<32x32xf32>
    %16 = arith.maximumf %14, %15 : vector<32x32xf32>
    %17 = arith.truncf %16 : vector<32x32xf32> to vector<32x32xbf16>
    %c0_12 = arith.constant 0 : index
    %c0_13 = arith.constant 0 : index
    %18 = vector.load %arg6[%c0_12, %c0_13] : memref<32x8xbf16, #tpu.memory_space<vmem>>, vector<32x8xbf16>
    %cst_14 = arith.constant dense<0.000000e+00> : vector<32x8xf32>
    %19 = tpu.matmul %17, %18, %cst_14 {dimension_numbers = #tpu.dot_dimension_numbers<[1], [0], [0], [1], [0, 0, 1, 1], [], []>} : vector<32x32xbf16>, vector<32x8xbf16>, vector<32x8xf32> -> vector<32x8xf32>
    %c0_15 = arith.constant 0 : index
    %c0_16 = arith.constant 0 : index
    %20 = vector.load %arg7[%c0_15, %c0_16] : memref<1x8xf32, #tpu.memory_space<vmem>>, vector<1x8xf32>
    %21 = vector.broadcast %20 : vector<1x8xf32> to vector<32x8xf32>
    %22 = arith.addf %19, %21 : vector<32x8xf32>
    %c0_17 = arith.constant 0 : index
    %c0_18 = arith.constant 0 : index
    %23 = vector.load %arg8[%c0_17, %c0_18] : memref<32x8xf32, #tpu.memory_space<vmem>>, vector<32x8xf32>
    tpu.vector_store %arg8[%c0_17, %c0_18], %22 {strides = array<i32>} : memref<32x8xf32, #tpu.memory_space<vmem>>, vector<32x8xf32>,
    return
  }
  func.func @transform_0(%arg0: i32) -> (i32, i32) {
    %c0_i32 = arith.constant 0 : i32
    %c0_i32_0 = arith.constant 0 : i32
    return %arg0, %c0_i32 : i32, i32
  }
  func.func @transform_1(%arg0: i32) -> (i32, i32) {
    %c0_i32 = arith.constant 0 : i32
    %c0_i32_0 = arith.constant 0 : i32
    %c0_i32_1 = arith.constant 0 : i32
    return %c0_i32, %c0_i32_0 : i32, i32
  }
  func.func @transform_2(%arg0: i32) -> (i32, i32) {
    %c0_i32 = arith.constant 0 : i32
    %c0_i32_0 = arith.constant 0 : i32
    %c0_i32_1 = arith.constant 0 : i32
    return %c0_i32, %c0_i32_0 : i32, i32
  }
  func.func @transform_3(%arg0: i32) -> (i32, i32) {
    %c0_i32 = arith.constant 0 : i32
    %c0_i32_0 = arith.constant 0 : i32
    %c0_i32_1 = arith.constant 0 : i32
    return %c0_i32, %c0_i32_0 : i32, i32
  }
  func.func @transform_4(%arg0: i32) -> (i32, i32) {
    %c0_i32 = arith.constant 0 : i32
    %c0_i32_0 = arith.constant 0 : i32
    %c0_i32_1 = arith.constant 0 : i32
    return %c0_i32, %c0_i32_0 : i32, i32
  }
  func.func @transform_5(%arg0: i32) -> (i32, i32) {
    %c0_i32 = arith.constant 0 : i32
    %c0_i32_0 = arith.constant 0 : i32
    %c0_i32_1 = arith.constant 0 : i32
    return %c0_i32, %c0_i32_0 : i32, i32
  }
  func.func @transform_6(%arg0: i32) -> (i32, i32) {
    %c0_i32 = arith.constant 0 : i32
    %c0_i32_0 = arith.constant 0 : i32
    %c0_i32_1 = arith.constant 0 : i32
    return %c0_i32, %c0_i32_0 : i32, i32
  }
  func.func @transform_7(%arg0: i32) -> (i32, i32) {
    %c0_i32 = arith.constant 0 : i32
    %c0_i32_0 = arith.constant 0 : i32
    return %arg0, %c0_i32 : i32, i32
  }
}

</mosaic_0001>

<bundles_post_ra>
// kernel: tpu_custom_call.1
= control target key start
LH: loop header
LB: loop body
LE: loop exit
PB: predicated region body
PF: predicated region fallthrough
CT: control target
= control target key end

     0   :  { %vm53_vm0 = vcmask 261120   ;;  %vm154_vm1 = vcmask 523264   ;;  %vm294_vm2 = vcmask 64512   ;;  %s462_s1 = inlined_call_operand.vmem [shape: bf16[32,64], index: 1, kind: input, shape index: {}]   ;;  %s463_s0 = inlined_call_operand.vmem [shape: s8[32,32], index: 0, kind: input, shape index: {}]   ;;  %s464_s3 = inlined_call_operand.vmem [shape: bf16[64,32], index: 3, kind: input, shape index: {}]   ;;  %s465_s2 = inlined_call_operand.vmem [shape: f32[1,64], index: 2, kind: input, shape index: {}]   ;;  %s466_s5 = inlined_call_operand.vmem [shape: bf16[32,8], index: 5, kind: input, shape index: {}]   ;;  %s467_s4 = inlined_call_operand.vmem [shape: f32[1,32], index: 4, kind: input, shape index: {}]   ;;  %s468_s6 = inlined_call_operand.vmem [shape: f32[1,8], index: 6, kind: input, shape index: {}]   ;;  %s469_s7 = inlined_call_operand.vmem [shape: f32[32,8], index: 7, kind: output, shape index: {}]  }
   0x1   :  { %v362_v0 = vld [vmem:[%s462_s1] sm:$0xff]   ;;  %v363_v1 = vld [vmem:[%s462_s1 + $0x8] sm:$0xff]   ;;  %v366_v7 = vld [vmem:[%s464_s3 + $0x10] sm:$0xff]  }
   0x2   :  { %334 = vmatprep.subr.bf16.mxu0 %v362_v0  ;;  %v27_v2 = vld [vmem:[%s463_s0] sm:$0xff]  ;;  %v365_v5 = vld [vmem:[%s464_s3 + $0x8] sm:$0xff]   ;;  %v367_v8 = vld [vmem:[%s464_s3 + $0x18] sm:$0xff]  }
   0x3   :  { %335 = vmatpush3.bf16.msra.mxu0 %v362_v0  ;;  %v28_v3 = vunpack.c.l.s8.bf16 %v27_v2  ;;  %v364_v4 = vld [vmem:[%s464_s3] sm:$0xff]   ;;  %v29_v6 = vunpack.c.h.s8.bf16 %v27_v2  ;;  %v369_v25 = vld [vmem:[%s466_s5 + $0x8] sm:$0xff]  }
   0x4   :  { %336 = vmatprep.subr.bf16.mxu0 %v363_v1  ;;  %342 = vmatprep.subr.bf16.mxu1 %v364_v4  ;;  %v303_v9 = vld [vmem:[%s465_s2] ss:$0 sm:$0xff] }
   0x5   :  { %338 = vmatprep.mubr.msk.bf16.mxu0 %vm53_vm0, %v28_v3  ;;  %343 = vmatpush3.bf16.msra.mxu1 %v364_v4  ;;  %v368_v24 = vld [vmem:[%s466_s5] sm:$0xff]  }
   0x6   :  { %344 = vmatprep.subr.bf16.mxu1 %v365_v5  ;;  %v308_v26 = vld [vmem:[%s467_s4] ss:$0 sm:$0xff] }
   0x7   :  { %337 = vmatpush3.bf16.msra.mxu0 %v363_v1  ;;  %v315_v41 = vld [vmem:[%s468_s6] ss:$0 sm:$0xff] }
   0x8   :  { %354 = vmatprep.subr.bf16.mxu0 %v368_v24 }
   0x9   :  { %345 = vmatpush3.bf16.msra.mxu1 %v365_v5 }
   0xa   :  { %339 = vmatmul.mubr.msk.bf16.vlgmr.msra.gmra.mrb[0].mxu0 %vm53_vm0, %v29_v6  ;;  %346 = vmatprep.subr.bf16.mxu1 %v366_v7 }
   0xb   :  { %355 = vmatpush3.bf16.msra.mxu0 %v368_v24 }
   0xc   :  { %356 = vmatprep.subr.bf16.mxu0 %v369_v25 }
   0xd   :  { %347 = vmatpush3.bf16.msra.mxu1 %v366_v7 }
   0xe   :  { %348 = vmatprep.subr.bf16.mxu1 %v367_v8 }
   0xf   :  { %357 = vmatpush3.bf16.msra.mxu0 %v369_v25 }
  0x11   :  { %349 = vmatpush3.bf16.msra.mxu1 %v367_v8 }
  0xdd   :  { %v340_v10 = vpop.f32.mrb[0].mxu0 }
  0xde   :  { %v103_v11 = vadd.f32 %v340_v10, %v303_v9  ;;  %v94_v12 = vpop.f32.mrb[1].mxu0 }
  0xdf   :  { %v95_v13 = vadd.f32 %v303_v9, %v94_v12  ;;  %v341_v14 = vpop.f32.mrb[2].mxu0 }
  0xe0   :  { %v106_v15 = vadd.f32 %v341_v14, %v303_v9  ;;  %v97_v16 = vpop.f32.mrb[3].mxu0  ;;  %v111_v18 = vmax.f32 %v103_v11, 0.0 }
  0xe1   :  { %v98_v17 = vadd.f32 %v303_v9, %v97_v16  ;;  %v109_v20 = vmax.f32 %v95_v13, 0.0 }
  0xe2   :  { %v112_v19 = vmax.f32 %v106_v15, 0.0 }
  0xe3   :  { %v110_v21 = vmax.f32 %v98_v17, 0.0 }
  0xe4   :  { %v114_v22 = vpack.c.bf16 %v112_v19, %v111_v18 }
  0xe5   :  { %v113_v23 = vpack.c.bf16 %v110_v21, %v109_v20 }
  0xe7   :  { %350 = vmatprep.mubr.msk.bf16.mxu1 %vm154_vm1, %v113_v23 }
  0xe8   :  { %351 = vmatmul.mubr.msk.bf16.vlgmr.msra.gmra.mrb[0].mxu1 %vm154_vm1, %v114_v22 }
 0x1bb   :  { %v352_v27 = vpop.f32.mrb[0].mxu1 }
 0x1bc   :  { %v204_v28 = vadd.f32 %v352_v27, %v308_v26  ;;  %v195_v29 = vpop.f32.mrb[1].mxu1 }
 0x1bd   :  { %v196_v30 = vadd.f32 %v308_v26, %v195_v29  ;;  %v353_v31 = vpop.f32.mrb[2].mxu1 }
 0x1be   :  { %v207_v32 = vadd.f32 %v353_v31, %v308_v26  ;;  %v198_v33 = vpop.f32.mrb[3].mxu1  ;;  %v212_v35 = vmax.f32 %v204_v28, 0.0 }
 0x1bf   :  { %v199_v34 = vadd.f32 %v308_v26, %v198_v33  ;;  %v210_v37 = vmax.f32 %v196_v30, 0.0 }
 0x1c0   :  { %v213_v36 = vmax.f32 %v207_v32, 0.0 }
 0x1c1   :  { %v211_v38 = vmax.f32 %v199_v34, 0.0 }
 0x1c2   :  { %v215_v39 = vpack.c.bf16 %v213_v36, %v212_v35 }
 0x1c3   :  { %v214_v40 = vpack.c.bf16 %v211_v38, %v210_v37 }
 0x1c5   :  { %358 = vmatprep.mubr.msk.bf16.mxu0 %vm53_vm0, %v214_v40 }
 0x1c6   :  { %359 = vmatmul.mubr.msk.bf16.vlgmr.msra.gmra.mrb[4].mxu0 %vm53_vm0, %v215_v39 }
 0x299   :  { %v360_v42 = vpop.f32.mrb[4].mxu0 }
 0x29a   :  { %v288_v43 = vadd.f32 %v360_v42, %v315_v41  ;;  %v279_v44 = vpop.f32.mrb[5].mxu0 }
 0x29b   :  { %v280_v45 = vadd.f32 %v315_v41, %v279_v44  ;;  %v361_v46 = vpop.f32.mrb[6].mxu0 }
 0x29c   :  { %297 = vst.msk [vmem:[%s469_s7 + $0x10] sm:$0xff] %vm294_vm2, %v288_v43  ;;  %v291_v47 = vadd.f32 %v361_v46, %v315_v41  ;;  %v282_v48 = vpop.f32.mrb[7].mxu0 }
 0x29d   :  { %295 = vst.msk [vmem:[%s469_s7] sm:$0xff] %vm294_vm2, %v280_v45  ;;  %v283_v49 = vadd.f32 %v315_v41, %v282_v48 }
 0x29e   :  { %298 = vst.msk [vmem:[%s469_s7 + $0x18] sm:$0xff] %vm294_vm2, %v291_v47 }
 0x29f   :  { %296 = vst.msk [vmem:[%s469_s7 + $0x8] sm:$0xff] %vm294_vm2, %v283_v49 }

</bundles_post_ra>
